<compile_context>
chip_gen: v6e
topology: v6e:2x2x1
jax: 0.10.0
libtpu: 0.0.40
codegen_flags: <defaults>
</compile_context>

<pallas_src>
import jax
import jax.numpy as jnp
from jax.experimental import pallas as pl
from jax.experimental.pallas import tpu as pltpu


def _make_self_attn_kernel(return_attention):
    def kernel(x_ref, m_ref, w1_ref, w2_ref, out_ref, *rest):
        # x_ref:    (S, Bt, H)  batch-block of the input, sequence-major (native layout)
        # m_ref:    (S, Bt, 1)  mask block (1 = content, 0 = padding), float32
        # w1_ref:   (H, U)      = weight_1.weight.T
        # w2_ref:   (U, A)      = weight_2.weight.T
        # out_ref:  (Bt, H)
        # rest[0]:  (S, Bt, A)  attention weights (only when return_attention)
        S, Bt, H = x_ref.shape
        A = w2_ref.shape[1]

        x = x_ref[...]                                              # (S, Bt, H)

        # One large MXU matmul per grid step: (S*Bt, H) @ (H, U), f32 accumulation.
        hbar = jnp.tanh(
            jnp.dot(x.reshape(S * Bt, H), w1_ref[...],
                    preferred_element_type=jnp.float32))            # (S*Bt, U) f32

        # Attention logits: (S*Bt, U) @ (U, A) -> back to (S, Bt, A).
        logits = jnp.dot(hbar.astype(w2_ref.dtype), w2_ref[...],
                         preferred_element_type=jnp.float32).reshape(S, Bt, A)

        # Padding -> -1e20 (single VPU select instead of mul/mul/add).
        logits = jnp.where(m_ref[...] > 0.0, logits, -1e20)         # (S, Bt, A)

        # Numerically-stable softmax over the sequence axis.  S is the LEADING axis, so
        # max/sum are plain elementwise reductions across the S planes (no relayout).
        m_max = jnp.max(logits, axis=0, keepdims=True)              # (1, Bt, A)
        e = jnp.exp(logits - m_max)                                 # (S, Bt, A)
        denom = jnp.sum(e, axis=0, keepdims=True)                   # (1, Bt, A)
        alphas = e * pl.reciprocal(denom, approx=True)              # (S, Bt, A)

        if return_attention:
            rest[0][...] = alphas.astype(rest[0].dtype)

        # mean_over_heads(alphas @ x) == mean_over_heads(alphas) @ x :
        # fold the head mean first (small lane-axis reduce on the XLU), then the context
        # is a broadcast multiply + leading-axis sum -> (Bt, H).
        w = jnp.mean(alphas, axis=2, keepdims=True)                 # (S, Bt, 1)
        ctx = jnp.sum(x.astype(jnp.float32) * w, axis=0)            # (Bt, H) f32
        out_ref[...] = ctx.astype(out_ref.dtype)

    return kernel


def _choose_block_b(batch_size, per_batch_block_bytes):
    """Batch-block heuristic.

    Bt must divide B and be a multiple of 8 (sublane tiling) unless it spans the whole
    batch.  Keep the double-buffered per-step blocks within a conservative VMEM budget
    (safe for v7x's 64 MiB VMEM / 32 MiB scoped default) and keep >= 2 grid steps when
    possible so both v7x TensorCores get work from the "parallel" batch axis.
    """
    if batch_size % 8 != 0:
        return batch_size  # block dims equal to the full array dims are always legal
    budget_bytes = 8 * 1024 * 1024
    bt = 8
    while (2 * bt <= batch_size and batch_size % (2 * bt) == 0
           and 2 * (2 * bt) * per_batch_block_bytes <= budget_bytes):
        bt *= 2
    if bt == batch_size and batch_size >= 16:
        bt //= 2  # leave >= 2 parallel grid steps (v7x: 2 TensorCores / chip)
    return bt


def self_attentive_forward(batch_sbh, mask_sb, w1, w2, *, compute_dtype=None,
                           block_b=None, return_attention=True):
    """batch_sbh: (S, B, H), mask_sb: (S, B), w1: (U, H) = weight_1.weight,
    w2: (A, U) = weight_2.weight.

    Returns `output (B, H)` (float32) and, when `return_attention`, also
    `alphas (B, A, S)` (float32), matching the PyTorch module in eval mode.

    compute_dtype: dtype for the DMA'd activations/weights and MXU matmuls
    (e.g. jnp.bfloat16 on v6e/v7x).  Accumulation, masking, softmax stay float32.
    """
    S, B, H = batch_sbh.shape
    U = w1.shape[0]
    A = w2.shape[0]
    cdt = jnp.dtype(compute_dtype) if compute_dtype is not None else jnp.dtype(batch_sbh.dtype)

    x = jnp.asarray(batch_sbh, cdt)                          # (S, B, H): no HBM transpose
    m = jnp.asarray(mask_sb, jnp.float32).reshape(S, B, 1)   # metadata-only reshape
    w1t = jnp.asarray(w1, cdt).T                             # (H, U)  (tiny)
    w2t = jnp.asarray(w2, cdt).T                             # (U, A)  (tiny)

    # Per-batch-element bytes of all pipelined blocks (x, mask, out, and attn if emitted).
    per_b_bytes = S * H * x.dtype.itemsize + S * 4 + H * 4
    if return_attention:
        per_b_bytes += S * A * 4
    Bt = block_b if block_b is not None else _choose_block_b(B, per_b_bytes)
    assert B % Bt == 0, (B, Bt)

    out_bytes = B * H * 4 + (S * B * A * 4 if return_attention else 0)
    cost = pl.CostEstimate(
        flops=2 * B * S * H * U + 2 * B * S * U * A + 2 * B * S * H,
        transcendentals=B * S * U + B * A * S,
        bytes_accessed=(x.size * x.dtype.itemsize + m.size * 4
                        + w1t.size * w1t.dtype.itemsize + w2t.size * w2t.dtype.itemsize
                        + out_bytes),
    )

    out_shape = [jax.ShapeDtypeStruct((B, H), jnp.float32)]
    out_specs = [pl.BlockSpec((Bt, H), lambda b: (b, 0))]
    if return_attention:
        out_shape.append(jax.ShapeDtypeStruct((S, B, A), jnp.float32))
        out_specs.append(pl.BlockSpec((S, Bt, A), lambda b: (0, b, 0)))

    results = pl.pallas_call(
        _make_self_attn_kernel(return_attention),
        out_shape=tuple(out_shape),
        grid_spec=pltpu.PrefetchScalarGridSpec(
            num_scalar_prefetch=0,
            grid=(B // Bt,),
            in_specs=[
                pl.BlockSpec((S, Bt, H), lambda b: (0, b, 0)),
                pl.BlockSpec((S, Bt, 1), lambda b: (0, b, 0)),
                pl.BlockSpec((H, U), lambda b: (0, 0)),
                pl.BlockSpec((U, A), lambda b: (0, 0)),
            ],
            out_specs=out_specs,
        ),
        compiler_params=pltpu.CompilerParams(dimension_semantics=(pltpu.PARALLEL,)),
        cost_estimate=cost,
    )(x, m, w1t, w2t)

    if not return_attention:
        return results[0]

    out, attn_sba = results
    # Small permute of the attention weights (A/H the size of the input) to the module's
    # (B, A, S) layout; done in XLA and dead-code-eliminated when only `out` is consumed.
    # TODO(synk): move this permute in-kernel once Mosaic minor-dim relayout (einshape)
    # is exercised/verified on this config.
    alphas = jnp.transpose(attn_sba, (1, 2, 0))
    return out, alphas


def _reference_forward(batch_sbh, mask_sb, w1, w2):
    """Pure-JAX reference mirroring the PyTorch module (eval mode), float32."""
    x = jnp.transpose(batch_sbh, (1, 0, 2)).astype(jnp.float32)             # (B, S, H)
    hbar = jnp.tanh(jnp.einsum("bsh,uh->bsu", x, w1.astype(jnp.float32)))   # (B, S, U)
    logits = jnp.einsum("bsu,au->bas", hbar, w2.astype(jnp.float32))        # (B, A, S)
    m = jnp.transpose(mask_sb, (1, 0))[:, None, :].astype(jnp.float32)      # (B, 1, S)
    logits = logits * m + (1.0 - m) * (-1e20)
    alphas = jax.nn.softmax(logits, axis=-1)                                # (B, A, S)
    out = jnp.mean(jnp.einsum("bas,bsh->bah", alphas, x), axis=1)           # (B, H)
    return out, alphas


if __name__ == "__main__":
    seq_len, batch_size, hidden_size = 8, 16, 32
    num_attention_units, num_attention_heads = 16, 4

    key = jax.random.PRNGKey(0)
    k_batch, k_w1, k_w2 = jax.random.split(key, 3)

    batch = jax.random.normal(k_batch, (seq_len, batch_size, hidden_size), jnp.float32)

    # Varied padding: sequence lengths 1..8 repeating across the batch.
    lengths = (jnp.arange(batch_size) % seq_len) + 1
    mask = (jnp.arange(seq_len)[:, None] < lengths[None, :]).astype(jnp.float32)  # (S, B)

    # nn.Linear(...).weight shapes, uniform_(-0.1, 0.1).
    w1 = jax.random.uniform(k_w1, (num_attention_units, hidden_size),
                            minval=-0.1, maxval=0.1, dtype=jnp.float32)
    w2 = jax.random.uniform(k_w2, (num_attention_heads, num_attention_units),
                            minval=-0.1, maxval=0.1, dtype=jnp.float32)

    ref_out, ref_alphas = _reference_forward(batch, mask, w1, w2)

    # Full path: output + attention weights (compute_output_and_attention_weights).
    out, alphas = self_attentive_forward(batch, mask, w1, w2)
    out, alphas = jax.block_until_ready((out, alphas))
    assert out.shape == (batch_size, hidden_size)
    assert alphas.shape == (batch_size, num_attention_heads, seq_len)
    assert jnp.allclose(out, ref_out, atol=1e-2, rtol=1e-2), float(jnp.max(jnp.abs(out - ref_out)))
    assert jnp.allclose(alphas, ref_alphas, atol=1e-2, rtol=1e-2)

    # forward() path: output only (no attention-weight store / writeback).
    out_only = self_attentive_forward(batch, mask, w1, w2, return_attention=False)
    out_only = jax.block_until_ready(out_only)
    assert out_only.shape == (batch_size, hidden_size)
    assert jnp.allclose(out_only, ref_out, atol=1e-2, rtol=1e-2)

    # bf16 DMA/MXU path (f32 accumulation + f32 softmax): halves HBM traffic on v6e/v7x.
    out_bf, alphas_bf = self_attentive_forward(batch, mask, w1, w2,
                                               compute_dtype=jnp.bfloat16)
    out_bf, alphas_bf = jax.block_until_ready((out_bf, alphas_bf))
    assert jnp.allclose(out_bf, ref_out, atol=5e-2, rtol=5e-2)
    assert jnp.allclose(alphas_bf, ref_alphas, atol=5e-2, rtol=5e-2)

    print("KERNEL_OK")
</pallas_src>

<mosaic_0001>
module attributes {stable_mosaic.version = 11 : i64} {
  func.func @kernel(%arg0: i32, %arg1: memref<8x8x32xf32, #tpu.memory_space<vmem>>, %arg2: memref<8x8x1xf32, #tpu.memory_space<vmem>>, %arg3: memref<32x16xf32, #tpu.memory_space<vmem>>, %arg4: memref<16x4xf32, #tpu.memory_space<vmem>>, %arg5: memref<8x32xf32, #tpu.memory_space<vmem>>, %arg6: memref<8x8x4xf32, #tpu.memory_space<vmem>>) attributes {dimension_semantics = [#tpu.dimension_semantics<parallel>], iteration_bounds = array<i64: 2>, scalar_prefetch = 0 : i64, scratch_operands = 0 : i64, tpu.core_type = #tpu.core_type<tc>, window_params = [{transform_indices = @transform_0, window_bounds = array<i64: 8, 8, 32>}, {transform_indices = @transform_1, window_bounds = array<i64: 8, 8, 1>}, {pipeline_mode = #tpu.pipeline_mode<synchronous>, transform_indices = @transform_2, window_bounds = array<i64: 32, 16>}, {pipeline_mode = #tpu.pipeline_mode<synchronous>, transform_indices = @transform_3, window_bounds = array<i64: 16, 4>}, {transform_indices = @transform_4, window_bounds = array<i64: 8, 32>}, {transform_indices = @transform_5, window_bounds = array<i64: 8, 8, 4>}]} {
    %c0 = arith.constant 0 : index
    %c0_0 = arith.constant 0 : index
    %c0_1 = arith.constant 0 : index
    %0 = vector.load %arg1[%c0, %c0_0, %c0_1] : memref<8x8x32xf32, #tpu.memory_space<vmem>>, vector<8x8x32xf32>
    %1 = vector.shape_cast %0 : vector<8x8x32xf32> to vector<64x32xf32>
    %c0_2 = arith.constant 0 : index
    %c0_3 = arith.constant 0 : index
    %2 = vector.load %arg3[%c0_2, %c0_3] : memref<32x16xf32, #tpu.memory_space<vmem>>, vector<32x16xf32>
    %cst = arith.constant dense<0.000000e+00> : vector<64x16xf32>
    %3 = tpu.matmul %1, %2, %cst {dimension_numbers = #tpu.dot_dimension_numbers<[1], [0], [0], [1], [0, 0, 1, 1], [], []>} : vector<64x32xf32>, vector<32x16xf32>, vector<64x16xf32> -> vector<64x16xf32>
    %4 = math.tanh %3 : vector<64x16xf32>
    %c0_4 = arith.constant 0 : index
    %c0_5 = arith.constant 0 : index
    %5 = vector.load %arg4[%c0_4, %c0_5] : memref<16x4xf32, #tpu.memory_space<vmem>>, vector<16x4xf32>
    %cst_6 = arith.constant dense<0.000000e+00> : vector<64x4xf32>
    %6 = tpu.matmul %4, %5, %cst_6 {dimension_numbers = #tpu.dot_dimension_numbers<[1], [0], [0], [1], [0, 0, 1, 1], [], []>} : vector<64x16xf32>, vector<16x4xf32>, vector<64x4xf32> -> vector<64x4xf32>
    %7 = vector.shape_cast %6 : vector<64x4xf32> to vector<8x8x4xf32>
    %c0_7 = arith.constant 0 : index
    %c0_8 = arith.constant 0 : index
    %c0_9 = arith.constant 0 : index
    %8 = vector.load %arg2[%c0_7, %c0_8, %c0_9] : memref<8x8x1xf32, #tpu.memory_space<vmem>>, vector<8x8x1xf32>
    %cst_10 = arith.constant 0.000000e+00 : f32
    %9 = vector.broadcast %cst_10 : f32 to vector<8x8x1xf32>
    %10 = arith.cmpf ogt, %8, %9 : vector<8x8x1xf32>
    %cst_11 = arith.constant -1.000000e+20 : f32
    %11 = vector.shape_cast %10 : vector<8x8x1xi1> to vector<8x8x1xi1>
    %12 = vector.broadcast %11 : vector<8x8x1xi1> to vector<8x8x4xi1>
    %13 = vector.broadcast %cst_11 : f32 to vector<8x8x4xf32>
    %14 = arith.select %12, %7, %13 : vector<8x8x4xi1>, vector<8x8x4xf32>
    %cst_12 = arith.constant dense<0xFF800000> : vector<8x4xf32>
    %15 = vector.multi_reduction <maximumf>, %14, %cst_12 [0] : vector<8x8x4xf32> to vector<8x4xf32>
    %16 = vector.shape_cast %15 : vector<8x4xf32> to vector<1x8x4xf32>
    %17 = vector.broadcast %16 : vector<1x8x4xf32> to vector<8x8x4xf32>
    %18 = arith.subf %14, %17 : vector<8x8x4xf32>
    %19 = math.exp %18 : vector<8x8x4xf32>
    %cst_13 = arith.constant dense<0.000000e+00> : vector<8x4xf32>
    %20 = vector.multi_reduction <add>, %19, %cst_13 [0] : vector<8x8x4xf32> to vector<8x4xf32>
    %21 = vector.shape_cast %20 : vector<8x4xf32> to vector<1x8x4xf32>
    %22 = tpu.reciprocal %21 {approx = true} : vector<1x8x4xf32> -> vector<1x8x4xf32>
    %23 = vector.broadcast %22 : vector<1x8x4xf32> to vector<8x8x4xf32>
    %24 = arith.mulf %19, %23 : vector<8x8x4xf32>
    %c0_14 = arith.constant 0 : index
    %c0_15 = arith.constant 0 : index
    %c0_16 = arith.constant 0 : index
    %25 = vector.load %arg6[%c0_14, %c0_15, %c0_16] : memref<8x8x4xf32, #tpu.memory_space<vmem>>, vector<8x8x4xf32>
    tpu.vector_store %arg6[%c0_14, %c0_15, %c0_16], %24 {strides = array<i32>} : memref<8x8x4xf32, #tpu.memory_space<vmem>>, vector<8x8x4xf32>,
    %cst_17 = arith.constant dense<0.000000e+00> : vector<8x8xf32>
    %26 = vector.multi_reduction <add>, %24, %cst_17 [2] : vector<8x8x4xf32> to vector<8x8xf32>
    %27 = vector.shape_cast %26 : vector<8x8xf32> to vector<8x8x1xf32>
    %cst_18 = arith.constant 4.000000e+00 : f32
    %28 = vector.broadcast %cst_18 : f32 to vector<8x8x1xf32>
    %29 = arith.divf %27, %28 : vector<8x8x1xf32>
    %30 = vector.broadcast %29 : vector<8x8x1xf32> to vector<8x8x32xf32>
    %31 = arith.mulf %0, %30 : vector<8x8x32xf32>
    %cst_19 = arith.constant dense<0.000000e+00> : vector<8x32xf32>
    %32 = vector.multi_reduction <add>, %31, %cst_19 [0] : vector<8x8x32xf32> to vector<8x32xf32>
    %c0_20 = arith.constant 0 : index
    %c0_21 = arith.constant 0 : index
    %33 = vector.load %arg5[%c0_20, %c0_21] : memref<8x32xf32, #tpu.memory_space<vmem>>, vector<8x32xf32>
    tpu.vector_store %arg5[%c0_20, %c0_21], %32 {strides = array<i32>} : memref<8x32xf32, #tpu.memory_space<vmem>>, vector<8x32xf32>,
    return
  }
  func.func @transform_0(%arg0: i32) -> (i32, i32, i32) {
    %c0_i32 = arith.constant 0 : i32
    %c0_i32_0 = arith.constant 0 : i32
    %c0_i32_1 = arith.constant 0 : i32
    return %c0_i32, %arg0, %c0_i32_0 : i32, i32, i32
  }
  func.func @transform_1(%arg0: i32) -> (i32, i32, i32) {
    %c0_i32 = arith.constant 0 : i32
    %c0_i32_0 = arith.constant 0 : i32
    %c0_i32_1 = arith.constant 0 : i32
    return %c0_i32, %arg0, %c0_i32_0 : i32, i32, i32
  }
  func.func @transform_2(%arg0: i32) -> (i32, i32) {
    %c0_i32 = arith.constant 0 : i32
    %c0_i32_0 = arith.constant 0 : i32
    %c0_i32_1 = arith.constant 0 : i32
    return %c0_i32, %c0_i32_0 : i32, i32
  }
  func.func @transform_3(%arg0: i32) -> (i32, i32) {
    %c0_i32 = arith.constant 0 : i32
    %c0_i32_0 = arith.constant 0 : i32
    %c0_i32_1 = arith.constant 0 : i32
    return %c0_i32, %c0_i32_0 : i32, i32
  }
  func.func @transform_4(%arg0: i32) -> (i32, i32) {
    %c0_i32 = arith.constant 0 : i32
    %c0_i32_0 = arith.constant 0 : i32
    return %arg0, %c0_i32 : i32, i32
  }
  func.func @transform_5(%arg0: i32) -> (i32, i32, i32) {
    %c0_i32 = arith.constant 0 : i32
    %c0_i32_0 = arith.constant 0 : i32
    %c0_i32_1 = arith.constant 0 : i32
    return %c0_i32, %arg0, %c0_i32_0 : i32, i32, i32
  }
}

</mosaic_0001>

<bundles_post_ra>
// kernel: tpu_custom_call.1
= control target key start
LH: loop header
LB: loop body
LE: loop exit
PB: predicated region body
PF: predicated region fallthrough
CT: control target
= control target key end

     0   :  { %11 = vsyncpa [#allocation5], 0  ;;  %s1554_s0 = inlined_call_operand.vmem [shape: f32[8,16,32], index: 0, kind: input, shape index: {}]   ;;  %s1555_s1 = inlined_call_operand.vmem [shape: f32[8,16,1], index: 1, kind: input, shape index: {}]   ;;  %s1556_s2 = inlined_call_operand.vmem [shape: f32[32,16], index: 2, kind: input, shape index: {}]   ;;  %s1557_s3 = inlined_call_operand.vmem [shape: f32[16,4], index: 3, kind: input, shape index: {}]   ;;  %s1558_s4 = inlined_call_operand.hbm [shape: f32[16,32], index: 4, kind: output, shape index: {0}]   ;;  %s1559_s5 = inlined_call_operand.vmem [shape: f32[8,16,4], index: 5, kind: output, shape index: {1}]  }
   0x1   :  { %13 = vsyncpa [#allocation5 + $0x1], 0  ;;  %s1308_s18 = smov 0   ;;  %s1310_s19 = smov 0  }
   0x2   :  { %s1312_s20 = smov 0   ;;  %s1314_s21 = smov 0  }
   0x3 LB: > { %s1329_s22 = sadd.s32 4294967295, %s1274_s21   ;;  %s1046_s23 = sadd.s32 4294967294, %s1274_s21   ;;  %s1274_s21 = sphi %s1314_s21, %s1568_s21   ;;  %s1270_s20 = sphi %s1312_s20, %s1567_s20   ;;  %s1266_s19 = sphi %s1310_s19, %s1566_s19   ;;  %s1262_s18 = sphi %s1308_s18, %s1565_s18  }
   0x4   : > { %s1333_s24 = sadd.s32 1, %s1274_s21   ;;  %s26_s25 = sadd.s32 1, %s1270_s20 }
   0x5   : > { %s23_s26 = ssub.s32 %s1274_s21, %s1333_s24  ;;  %p33_p0 = scmp.ne.s32.totalorder %s1270_s20, %s1266_s19 }
   0x6   : > { %p24_p1 = scmp.eq.s32.totalorder %s23_s26, 0  ;;  %p34_p2 = scmp.eq.s32.totalorder %s1274_s21, 0 }
   0x7   : > { %p131_p3 = scmp.eq.s32.totalorder %s1329_s22, 1  ;;  %p136_p4 = scmp.ne.s32.totalorder %s1266_s19, %s1262_s18 }
   0x8   : > { %s1345_s27 = scalar_select %p24_p1, %s1270_s20, %s26_s25  }
   0x9   : > { %p1347_p5 = por %p34_p2, %p33_p0  ;;  %p1351_p6 = por %p131_p3, %p33_p0 }
   0xa   : > { %p137_p7 = scmp.eq.s32.totalorder %s1046_s23, 1  ;;  %p1560_p9 = scmp.ge.s32.totalorder %s1274_s21, 2 }
   0xc   : > { %p1355_p8 = por %p137_p7, %p136_p4  ;;  %185 = sbr.rel (%p1560_p9) target bundleno = 33 (0x21), region = 24 }
  0x11   : > { %188 = sbr.rel (!%p1347_p5) target bundleno = 25 (0x19), region = 28  ;;  %s190_s6 = sand.u32 (%p1347_p5), 1, %s1270_s20  }
  0x12   : > { %s1050_s7 = sshll.u32 (%p1347_p5), %s1274_s21, 3  ;;  %s1049_s8 = sshll.u32 (%p1347_p5), %s190_s6, 6 }
  0x13   : > { %s194_s11 = scalar_lea.vmem (%p1347_p5), %s1554_s0, %s1050_s7  ;;  %s192_s12 = scalar_lea.vmem (%p1347_p5), [#allocation2], %s1049_s8 }
  0x14   : > { %v237_v0 = vld [vmem:[%s194_s11] sm:$0xff] (%p1347_p5)  ;;  %v239_v1 = vld [vmem:[%s194_s11 + $0x10] sm:$0xff] (%p1347_p5) }
  0x15   : > { %v241_v2 = vld [vmem:[%s194_s11 + $0x20] sm:$0xff] (%p1347_p5)  ;;  %238 = vst [vmem:[%s192_s12] sm:$0xff] (%p1347_p5), %v237_v0  ;;  %240 = vst [vmem:[%s192_s12 + $0x8] sm:$0xff] (%p1347_p5), %v239_v1  ;;  %v243_v3 = vld [vmem:[%s194_s11 + $0x30] sm:$0xff] (%p1347_p5) }
  0x16   : > { %242 = vst [vmem:[%s192_s12 + $0x10] sm:$0xff] %v241_v2  ;;  %v245_v4 = vld [vmem:[%s194_s11 + $0x40] sm:$0xff]  ;;  %v247_v5 = vld [vmem:[%s194_s11 + $0x50] sm:$0xff]  ;;  %244 = vst [vmem:[%s192_s12 + $0x18] sm:$0xff] %v243_v3 }
  0x17   : > { %246 = vst [vmem:[%s192_s12 + $0x20] sm:$0xff] %v245_v4  ;;  %248 = vst [vmem:[%s192_s12 + $0x28] sm:$0xff] %v247_v5  ;;  %v249_v6 = vld [vmem:[%s194_s11 + $0x60] sm:$0xff]  ;;  %v251_v7 = vld [vmem:[%s194_s11 + $0x70] sm:$0xff] }
  0x18   : > { %250 = vst [vmem:[%s192_s12 + $0x30] sm:$0xff] %v249_v6  ;;  %252 = vst [vmem:[%s192_s12 + $0x38] sm:$0xff] %v251_v7 }
  0x19 PF: > { %258 = sbr.rel (!%p1347_p5) target bundleno = 33 (0x21), region = 66  ;;  %s260_s13 = sand.u32 (%p1347_p5), 1, %s1270_s20  }
  0x1a   : > { %s1052_s14 = sshll.u32 (%p1347_p5), %s1274_s21, 3  ;;  %s1051_s15 = sshll.u32 (%p1347_p5), %s260_s13, 6 }
  0x1b   : > { %s264_s23 = scalar_lea.vmem (%p1347_p5), %s1555_s1, %s1052_s14  ;;  %s262_s25 = scalar_lea.vmem (%p1347_p5), [#allocation3], %s1051_s15 }
  0x1c   : > { %v307_v8 = vld [vmem:[%s264_s23] sm:$0xff] (%p1347_p5)  ;;  %v309_v9 = vld [vmem:[%s264_s23 + $0x10] sm:$0xff] (%p1347_p5) }
  0x1d   : > { %v311_v10 = vld [vmem:[%s264_s23 + $0x20] sm:$0xff] (%p1347_p5)  ;;  %308 = vst [vmem:[%s262_s25] sm:$0xff] (%p1347_p5), %v307_v8  ;;  %310 = vst [vmem:[%s262_s25 + $0x8] sm:$0xff] (%p1347_p5), %v309_v9  ;;  %v313_v11 = vld [vmem:[%s264_s23 + $0x30] sm:$0xff] (%p1347_p5) }
  0x1e   : > { %312 = vst [vmem:[%s262_s25 + $0x10] sm:$0xff] %v311_v10  ;;  %v315_v12 = vld [vmem:[%s264_s23 + $0x40] sm:$0xff]  ;;  %v317_v13 = vld [vmem:[%s264_s23 + $0x50] sm:$0xff]  ;;  %314 = vst [vmem:[%s262_s25 + $0x18] sm:$0xff] %v313_v11 }
  0x1f   : > { %316 = vst [vmem:[%s262_s25 + $0x20] sm:$0xff] %v315_v12  ;;  %318 = vst [vmem:[%s262_s25 + $0x28] sm:$0xff] %v317_v13  ;;  %v319_v14 = vld [vmem:[%s264_s23 + $0x60] sm:$0xff]  ;;  %v321_v15 = vld [vmem:[%s264_s23 + $0x70] sm:$0xff] }
  0x20   : > { %320 = vst [vmem:[%s262_s25 + $0x30] sm:$0xff] %v319_v14  ;;  %322 = vst [vmem:[%s262_s25 + $0x38] sm:$0xff] %v321_v15 }
  0x21 PF: > { %p1053_p10 = scmp.ge.s32.totalorder %s1274_s21, 1  ;;  %p327_p11 = scmp.lt.s32.totalorder %s1274_s21, 3 }
  0x23   : > { %p328_p12 = pnand %p1053_p10, %p327_p11 }
  0x24   : > { %s1385_s8 = sand.u32 (!%p328_p12), 1, %s1266_s19   ;;  %s1076_s6 = sshll.u32 (!%p328_p12), %s1329_s22, 7 }
  0x25   : > { %331 = sbr.rel (%p328_p12) target bundleno = 708 (0x2c4), region = 104  ;;  %s1388_s9 = sshll.u32 (!%p328_p12), %s1385_s8, 6 }
  0x26   : > { %s336_s12 = scalar_lea.vmem (!%p328_p12), [#allocation2], %s1388_s9  ;;  %s343_s25 = scalar_lea.vmem (!%p328_p12), [#allocation3], %s1388_s9 }
  0x27   : > { %s1462_s26 = scalar_lea.vmem (!%p328_p12), [#allocation6], %s1388_s9  ;;  %s1056_s28 = sshll.u32 (!%p328_p12), %s1385_s8, 3 }
  0x28   : > { %s369_s7 = scalar_lea.vmem (!%p328_p12), [#allocation4], %s1056_s28  ;;  %s852_s13 = scalar_lea.sflag (!%p328_p12), [#allocation5], %s1385_s8 }
  0x29   : > { %s869_s9 = sshll.u32 (!%p328_p12), %s369_s7, 4  ;;  %s1277_s15 = smov (!%p328_p12), [#allocation4]   ;;  %s870_s9 = int_to_ptr.vmem [resolvable:$true] %s869_s9 }
  0x2a   : > { %v387_v16 = vld [vmem:[%s1556_s2 + $0x18] sm:$0xff]  ;;  %v386_v17 = vld [vmem:[%s1556_s2 + $0x10] sm:$0xff]  ;;  %vm388_vm0 = vcmask 261120   ;;  %v385_v18 = vld [vmem:[%s1556_s2 + $0x8] sm:$0xff]  ;;  %v1276_v30 = vmov 0   ;;  %vm528_vm9 = vcmask 130048  }
  0x2b   : > { %1102 = vmatprep.subr.mxu0 %v387_v16  ;;  %v1394_v19 = vld [vmem:[%s336_s12] sm:$0xff]  ;;  %v1401_v21 = vld [vmem:[%s336_s12 + $0x8] sm:$0xff]  ;;  %v1403_v22 = vld [vmem:[%s336_s12 + $0x10] sm:$0xff]  ;;  %1179 = vset.pattern.permute.xlu1 %v1276_v30  ;;  %vm722_vm15 = vcmask 31744   ;;  %s1214_s14 = scalar_lea.vmem %s870_s9, 128  ;;  %s1218_s16 = sshll.u32 %s1277_s15, 4  ;;  %s1219_s16 = int_to_ptr.vmem [resolvable:$false] %s1218_s16 }
  0x2c   : > { %1103 = vmatpush3.msra.mxu0 %v387_v16  ;;  %v384_v20 = vld [vmem:[%s1556_s2] sm:$0xff]  ;;  %1110 = vmatprep.mubr.msk.f32.mxu0 %vm388_vm0, %v1394_v19  ;;  %v1409_v23 = vld [vmem:[%s336_s12 + $0x18] sm:$0xff]  ;;  %v1417_v25 = vld [vmem:[%s336_s12 + $0x28] sm:$0xff]  ;;  %p1215_p13 = scmp.ne.s32.totalorder %s870_s9, %s1214_s14  ;;  %s1220_s17 = scalar_lea.vmem %s1219_s16, 256 }
  0x2d   : > { %1104 = vmatprep.subr.mxu0 %v386_v17  ;;  %v1411_v24 = vld [vmem:[%s336_s12 + $0x20] sm:$0xff]  ;;  %v1419_v26 = vld [vmem:[%s336_s12 + $0x30] sm:$0xff]  ;;  %v1425_v27 = vld [vmem:[%s336_s12 + $0x38] sm:$0xff]  ;;  %1178 = vset.pattern.permute.xlu0 %v1276_v30  ;;  %s867_s12 = scalar_lea.hbm %s1558_s4, %s1076_s6  ;;  %p1221_p2 = scmp.lt.s32.totalorder %s870_s9, %s1219_s16 }
  0x2e   : > { %1105 = vmatpush3.msra.mxu0 %v386_v17  ;;  %v527_v28 = vld [vmem:[%s1557_s3 + $0x8] sm:$0xff]  ;;  %v526_v29 = vld [vmem:[%s1557_s3] sm:$0xff]  ;;  %v660_v31 = vld [vmem:[%s343_s25 + $0x10] sm:$0xff]  ;;  %p1216_p0 = pnand %p1215_p13, %p1351_p6  ;;  %p1222_p3 = scmp.lt.s32.totalorder %s1220_s17, %s1214_s14 }
  0x2f   : > { %1106 = vmatprep.subr.mxu0 %v385_v18  ;;  %1122 = vmatprep.subr.mxu1 %v527_v28  ;;  %v658_v32 = vld [vmem:[%s343_s25] sm:$0xff]  ;;  %v661_v33 = vld [vmem:[%s343_s25 + $0x18] sm:$0xff]  ;;  %vm668_vm1 = vcmp.gt.f32.partialorder %v660_v31, 0.0  ;;  %v659_v34 = vld [vmem:[%s343_s25 + $0x8] sm:$0xff] }
  0x30   : > { %1107 = vmatpush3.msra.mxu0 %v385_v18  ;;  %1123 = vmatpush3.msra.mxu1 %v527_v28  ;;  %vm666_vm2 = vcmp.gt.f32.partialorder %v658_v32, 0.0  ;;  %vm669_vm3 = vcmp.gt.f32.partialorder %v661_v33, 0.0  ;;  %v676_v35 = vsel %vm668_vm1, 1, %v1276_v30  ;;  %vm667_vm4 = vcmp.gt.f32.partialorder %v659_v34, 0.0  ;;  %v663_v37 = vld [vmem:[%s343_s25 + $0x28] sm:$0xff]  ;;  %v662_v38 = vld [vmem:[%s343_s25 + $0x20] sm:$0xff]  ;;  %p1217_p1 = pneg %p1216_p0  ;;  %p1223_p4 = por %p1222_p3, %p1221_p2 }
  0x31   : > { %1108 = vmatprep.subr.mxu0 %v384_v20  ;;  %1124 = vmatprep.subr.mxu1 %v526_v29  ;;  %v674_v36 = vsel %vm666_vm2, 1, %v1276_v30  ;;  %v677_v39 = vsel %vm669_vm3, 1, %v1276_v30  ;;  %v675_v40 = vsel %vm667_vm4, 1, %v1276_v30  ;;  %vm671_vm5 = vcmp.gt.f32.partialorder %v663_v37, 0.0  ;;  %v665_v41 = vld [vmem:[%s343_s25 + $0x38] sm:$0xff]  ;;  %v664_v42 = vld [vmem:[%s343_s25 + $0x30] sm:$0xff] }
  0x32   : > { %1109 = vmatpush3.msra.mxu0 %v384_v20  ;;  %1125 = vmatpush3.msra.mxu1 %v526_v29  ;;  %vm670_vm6 = vcmp.gt.f32.partialorder %v662_v38, 0.0  ;;  %v679_v43 = vsel %vm671_vm5, 1, %v1276_v30  ;;  %vm673_vm7 = vcmp.gt.f32.partialorder %v665_v41, 0.0  ;;  %vm672_vm8 = vcmp.gt.f32.partialorder %v664_v42, 0.0  ;;  %p1224_p5 = pnand %p1223_p4, %p1217_p1 }
  0x33   : > { %1111 = vmatmul.mubr.msk.f32.vlgmr.msra.gmra.mxu0 %vm388_vm0, %v1401_v21  ;;  %689 = vperm.xlu1 %1179, %v676_v35   ;;  %v678_v44 = vsel %vm670_vm6, 1, %v1276_v30  ;;  %v681_v45 = vsel %vm673_vm7, 1, %v1276_v30  ;;  %v680_v46 = vsel %vm672_vm8, 1, %v1276_v30 }
  0x34   : > { %1113 = vmatprep.mubr.msk.f32.mxu0 %vm388_vm0, %v1403_v22  ;;  %683 = vperm.xlu0 %1178, %v674_v36  }
  0x37   : > { %1114 = vmatmul.mubr.msk.f32.gmra.mxu0 %vm388_vm0, %v1409_v23  ;;  %692 = vperm.xlu1 %1179, %v677_v39  }
  0x38   : > { %1116 = vmatprep.mubr.msk.f32.mxu0 %vm388_vm0, %v1411_v24  ;;  %686 = vperm.xlu0 %1178, %v675_v40  }
  0x3b   : > { %1117 = vmatmul.mubr.msk.f32.gmra.mxu0 %vm388_vm0, %v1417_v25  ;;  %698 = vperm.xlu1 %1179, %v679_v43  }
  0x3c   : > { %1119 = vmatprep.mubr.msk.f32.mxu0 %vm388_vm0, %v1419_v26  ;;  %695 = vperm.xlu0 %1178, %v678_v44  }
  0x3f   : > { %1120 = vmatmul.mubr.msk.f32.gmra.mxu0 %vm388_vm0, %v1425_v27  ;;  %704 = vperm.xlu1 %1179, %v681_v45  }
  0x40   : > { %701 = vperm.xlu0 %1178, %v680_v46  }
  0xae   : > { %v690_v63 = vpop.permute.xlu1 %689 }
  0xaf   : > { %v684_v0 = vpop.permute.xlu0 %683  ;;  %vm708_vm12 = vcmp.eq.s32.totalorder %v690_v63, 1 }
  0xb0   : > { %vm706_vm10 = vcmp.eq.s32.totalorder %v684_v0, 1 }
  0xb2   : > { %v693_v1 = vpop.permute.xlu1 %692 }
  0xb3   : > { %v687_v2 = vpop.permute.xlu0 %686  ;;  %vm709_vm1 = vcmp.eq.s32.totalorder %v693_v1, 1 }
  0xb4   : > { %vm707_vm11 = vcmp.eq.s32.totalorder %v687_v2, 1 }
  0xb6   : > { %v699_v5 = vpop.permute.xlu1 %698 }
  0xb7   : > { %v696_v7 = vpop.permute.xlu0 %695  ;;  %vm711_vm13 = vcmp.eq.s32.totalorder %v699_v5, 1 }
  0xb8   : > { %vm710_vm14 = vcmp.eq.s32.totalorder %v696_v7, 1 }
  0xba   : > { %v705_v10 = vpop.permute.xlu1 %704 }
  0xbb   : > { %v702_v12 = vpop.permute.xlu0 %701  ;;  %vm713_vm2 = vcmp.eq.s32.totalorder %v705_v10, 1 }
  0xbc   : > { %vm712_vm3 = vcmp.eq.s32.totalorder %v702_v12, 1 }
  0xf3   : > { %v1112_v47 = vpop.f32.mrf.mxu0 }
  0xf5   : > { %v479_v48 = vpop.f32.mrf.mxu0 }
  0xf6   : > { %1180 = vtanh.f32 %v479_v48 }
  0xf7   : > { %1182 = vtanh.f32 %v1112_v47  ;;  %v1115_v49 = vpop.f32.mrf.mxu0 }
  0xf9   : > { %v489_v50 = vpop.f32.mrf.mxu0 }
  0xfa   : > { %1184 = vtanh.f32 %v489_v50 }
  0xfb   : > { %1186 = vtanh.f32 %v1115_v49  ;;  %v1118_v51 = vpop.f32.mrf.mxu0 }
  0xfd   : > { %v499_v52 = vpop.f32.mrf.mxu0 }
  0xfe   : > { %1188 = vtanh.f32 %v499_v52 }
  0xff   : > { %1190 = vtanh.f32 %v1118_v51  ;;  %v1121_v53 = vpop.f32.mrf.mxu0 }
 0x101   : > { %v509_v54 = vpop.f32.mrf.mxu0 }
 0x102   : > { %1192 = vtanh.f32 %v509_v54 }
 0x103   : > { %v1181_v55 = vpop.eup %1180  ;;  %1194 = vtanh.f32 %v1121_v53 }
 0x104   : > { %v1183_v56 = vpop.eup %1182  ;;  %1126 = vmatprep.mubr.msk.f32.mxu1 %vm528_vm9, %v1181_v55 }
 0x105   : > { %1127 = vmatmul.mubr.msk.f32.vlgmr.msra.gmra.mxu1 %vm528_vm9, %v1183_v56 }
 0x107   : > { %v1185_v57 = vpop.eup %1184 }
 0x108   : > { %v1187_v58 = vpop.eup %1186  ;;  %1129 = vmatprep.mubr.msk.f32.mxu1 %vm528_vm9, %v1185_v57 }
 0x109   : > { %1130 = vmatmul.mubr.msk.f32.gmra.mxu1 %vm528_vm9, %v1187_v58 }
 0x10b   : > { %v1189_v59 = vpop.eup %1188 }
 0x10c   : > { %v1191_v60 = vpop.eup %1190  ;;  %1132 = vmatprep.mubr.msk.f32.mxu1 %vm528_vm9, %v1189_v59 }
 0x10d   : > { %1133 = vmatmul.mubr.msk.f32.gmra.mxu1 %vm528_vm9, %v1191_v60 }
 0x10f   : > { %v1193_v61 = vpop.eup %1192 }
 0x110   : > { %v1195_v62 = vpop.eup %1194  ;;  %1135 = vmatprep.mubr.msk.f32.mxu1 %vm528_vm9, %v1193_v61 }
 0x111   : > { %1136 = vmatmul.mubr.msk.f32.gmra.mxu1 %vm528_vm9, %v1195_v62 }
 0x1c5   : > { %v1128_v3 = vpop.f32.mrf.mxu1 }
 0x1c6   : > { %v715_v16 = vsel %vm707_vm11, %v1128_v3, -1e+20 }
 0x1c7   : > { %v619_v4 = vpop.f32.mrf.mxu1  ;;  %v724_v36 = vsel %vm722_vm15, %v715_v16, -inf }
 0x1c8   : > { %v714_v13 = vsel %vm706_vm10, %v619_v4, -1e+20 }
 0x1c9   : > { %v1131_v6 = vpop.f32.mrf.mxu1  ;;  %v723_v30 = vsel %vm722_vm15, %v714_v13, -inf }
 0x1ca   : > { %v717_v20 = vsel %vm709_vm1, %v1131_v6, -1e+20 }
 0x1cb   : > { %v629_v8 = vpop.f32.mrf.mxu1  ;;  %v726_v37 = vsel %vm722_vm15, %v717_v20, -inf }
 0x1cc   : > { %v716_v28 = vsel %vm708_vm12, %v629_v8, -1e+20 }
 0x1cd   : > { %v1134_v9 = vpop.f32.mrf.mxu1  ;;  %v725_v38 = vsel %vm722_vm15, %v716_v28, -inf }
 0x1ce   : > { %v719_v14 = vsel %vm711_vm13, %v1134_v9, -1e+20 }
 0x1cf   : > { %v639_v11 = vpop.f32.mrf.mxu1  ;;  %v729_v31 = vsel %vm722_vm15, %v719_v14, -inf }
 0x1d0   : > { %v718_v15 = vsel %vm710_vm14, %v639_v11, -1e+20  ;;  %v730_v40 = vmax.f32 %v724_v36, %v729_v31 }
 0x1d1   : > { %v727_v17 = vsel %vm722_vm15, %v718_v15, -inf  ;;  %v1137_v18 = vpop.f32.mrf.mxu1 }
 0x1d2   : > { %v721_v29 = vsel %vm713_vm2, %v1137_v18, -1e+20  ;;  %v728_v34 = vmax.f32 %v723_v30, %v727_v17 }
 0x1d3   : > { %v733_v32 = vsel %vm722_vm15, %v721_v29, -inf  ;;  %v649_v33 = vpop.f32.mrf.mxu1 }
 0x1d4   : > { %v720_v35 = vsel %vm712_vm3, %v649_v33, -1e+20  ;;  %v734_v41 = vmax.f32 %v726_v37, %v733_v32  ;;  %v735_v43 = vmax.f32 %v728_v34, %v730_v40 }
 0x1d5   : > { %v731_v39 = vsel %vm722_vm15, %v720_v35, -inf }
 0x1d6   : > { %v732_v42 = vmax.f32 %v725_v38, %v731_v39 }
 0x1d8   : > { %v736_v44 = vmax.f32 %v732_v42, %v734_v41 }
 0x1da   : > { %v737_v45 = vmax.f32 %v735_v43, %v736_v44 }
 0x1dc   : > { %v738_v46 = vsub.f32 %v714_v13, %v737_v45  ;;  %v740_v47 = vsub.f32 %v716_v28, %v737_v45  ;;  %v739_v49 = vsub.f32 %v715_v16, %v737_v45  ;;  %v741_v50 = vsub.f32 %v717_v20, %v737_v45 }
 0x1dd   : > { %v742_v52 = vsub.f32 %v718_v15, %v737_v45  ;;  %v743_v54 = vsub.f32 %v719_v14, %v737_v45  ;;  %v744_v56 = vsub.f32 %v720_v35, %v737_v45  ;;  %v745_v58 = vsub.f32 %v721_v29, %v737_v45 }
 0x1de   : > { %v746_v48 = vmul.f32 1.442695, %v738_v46  ;;  %v750_v51 = vmul.f32 1.442695, %v740_v47  ;;  %v748_v53 = vmul.f32 1.442695, %v739_v49 }
 0x1df   : > { %v752_v55 = vmul.f32 1.442695, %v741_v50  ;;  %v754_v57 = vmul.f32 1.442695, %v742_v52  ;;  %v756_v59 = vmul.f32 1.442695, %v743_v54 }
 0x1e0   : > { %1196 = vpow2.f32 %v746_v48  ;;  %v758_v60 = vmul.f32 1.442695, %v744_v56  ;;  %v760_v61 = vmul.f32 1.442695, %v745_v58 }
 0x1e1   : > { %1198 = vpow2.f32 %v750_v51 }
 0x1e2   : > { %1200 = vpow2.f32 %v748_v53 }
 0x1e3   : > { %1202 = vpow2.f32 %v752_v55 }
 0x1e4   : > { %1204 = vpow2.f32 %v754_v57 }
 0x1e5   : > { %1206 = vpow2.f32 %v756_v59 }
 0x1e6   : > { %1208 = vpow2.f32 %v758_v60 }
 0x1e7   : > { %1210 = vpow2.f32 %v760_v61 }
 0x1ed   : > { %v1197_v62 = vpop.eup %1196 }
 0x1ee   : > { %v1199_v63 = vpop.eup %1198  ;;  %v762_v0 = vsel %vm722_vm15, %v1197_v62, 0.0 }
 0x1ef   : > { %v1201_v1 = vpop.eup %1200  ;;  %v765_v5 = vsel %vm722_vm15, %v1199_v63, 0.0 }
 0x1f0   : > { %v763_v2 = vsel %vm722_vm15, %v1201_v1, 0.0  ;;  %v1203_v3 = vpop.eup %1202 }
 0x1f1   : > { %v764_v4 = vadd.f32 %v763_v2, %v762_v0  ;;  %v1205_v6 = vpop.eup %1204  ;;  %v767_v8 = vsel %vm722_vm15, %v1203_v3, 0.0 }
 0x1f2   : > { %v1207_v9 = vpop.eup %1206  ;;  %v769_v11 = vsel %vm722_vm15, %v1205_v6, 0.0 }
 0x1f3   : > { %v766_v7 = vadd.f32 %v765_v5, %v764_v4  ;;  %v1209_v12 = vpop.eup %1208  ;;  %v771_v14 = vsel %vm722_vm15, %v1207_v9, 0.0 }
 0x1f4   : > { %v1211_v15 = vpop.eup %1210  ;;  %v773_v17 = vsel %vm722_vm15, %v1209_v12, 0.0 }
 0x1f5   : > { %v768_v10 = vadd.f32 %v767_v8, %v766_v7  ;;  %v775_v20 = vsel %vm722_vm15, %v1211_v15, 0.0 }
 0x1f7   : > { %v770_v13 = vadd.f32 %v769_v11, %v768_v10 }
 0x1f9   : > { %v772_v16 = vadd.f32 %v771_v14, %v770_v13 }
 0x1fb   : > { %v774_v18 = vadd.f32 %v773_v17, %v772_v16 }
 0x1fd   : > { %v776_v28 = vadd.f32 %v775_v20, %v774_v18 }
 0x1ff   : > { %1212 = vrcp.f32 %v776_v28 }
 0x20c   : > { %v1213_v29 = vpop.eup %1212 }
 0x20d   : > { %v779_v30 = vmul.f32 %v1213_v29, %v1201_v1  ;;  %v778_v31 = vmul.f32 %v1213_v29, %v1197_v62  ;;  %v782_v32 = vmul.f32 %v1213_v29, %v1205_v6  ;;  %v780_v33 = vmul.f32 %v1213_v29, %v1199_v63 }
 0x20e   : > { %v784_v34 = vmul.f32 %v1213_v29, %v1209_v12  ;;  %v781_v35 = vmul.f32 %v1213_v29, %v1203_v3  ;;  %v783_v36 = vmul.f32 %v1213_v29, %v1207_v9  ;;  %v785_v37 = vmul.f32 %v1213_v29, %v1211_v15 }
 0x20f   : > { %v797_v38 = vsel %vm722_vm15, %v779_v30, 0.0  ;;  %787 = vst.msk [vmem:[%s1462_s26 + $0x8] sm:$0xff] %vm722_vm15, %v779_v30  ;;  %v794_v39 = vsel %vm722_vm15, %v778_v31, 0.0  ;;  %786 = vst.msk [vmem:[%s1462_s26] sm:$0xff] %vm722_vm15, %v778_v31  ;;  %v806_v40 = vsel %vm722_vm15, %v782_v32, 0.0  ;;  %v800_v41 = vsel %vm722_vm15, %v780_v33, 0.0 }
 0x210   : > { %790 = vst.msk [vmem:[%s1462_s26 + $0x20] sm:$0xff] %vm722_vm15, %v782_v32  ;;  %788 = vst.msk [vmem:[%s1462_s26 + $0x10] sm:$0xff] %vm722_vm15, %v780_v33  ;;  %798 = vadd.xlane.f32.xlu1 %v797_v38  ;;  %795 = vadd.xlane.f32.xlu0 %v794_v39  ;;  %v812_v42 = vsel %vm722_vm15, %v784_v34, 0.0  ;;  %v803_v43 = vsel %vm722_vm15, %v781_v35, 0.0  ;;  %v809_v44 = vsel %vm722_vm15, %v783_v36, 0.0  ;;  %v815_v45 = vsel %vm722_vm15, %v785_v37, 0.0 }
 0x211   : > { %792 = vst.msk [vmem:[%s1462_s26 + $0x30] sm:$0xff] %vm722_vm15, %v784_v34  ;;  %789 = vst.msk [vmem:[%s1462_s26 + $0x18] sm:$0xff] %vm722_vm15, %v781_v35 }
 0x212   : > { %791 = vst.msk [vmem:[%s1462_s26 + $0x28] sm:$0xff] %vm722_vm15, %v783_v36  ;;  %793 = vst.msk [vmem:[%s1462_s26 + $0x38] sm:$0xff] %vm722_vm15, %v785_v37 }
 0x214   : > { %807 = vadd.xlane.f32.xlu1 %v806_v40  ;;  %801 = vadd.xlane.f32.xlu0 %v800_v41 }
 0x218   : > { %813 = vadd.xlane.f32.xlu1 %v812_v42  ;;  %804 = vadd.xlane.f32.xlu0 %v803_v43 }
 0x21c   : > { %810 = vadd.xlane.f32.xlu0 %v809_v44 }
 0x220   : > { %816 = vadd.xlane.f32.xlu0 %v815_v45 }
 0x299   : > { %v799_v46 = vpop.xlane.xlu1 %798  ;;  %v796_v47 = vpop.xlane.xlu0 %795 }
 0x29a   : > { %v820_v48 = vmul.f32 0.25, %v799_v46  ;;  %v819_v49 = vmul.f32 0.25, %v796_v47 }
 0x29c   : > { %v828_v50 = vmul.f32 %v820_v48, %v1401_v21  ;;  %v827_v51 = vmul.f32 %v819_v49, %v1394_v19 }
 0x29d   : > { %v808_v52 = vpop.xlane.xlu1 %807  ;;  %v802_v53 = vpop.xlane.xlu0 %801 }
 0x29e   : > { %v821_v54 = vmul.f32 0.25, %v802_v53  ;;  %v836_v55 = vsel %vm388_vm0, %v828_v50, 0.0  ;;  %v835_v56 = vsel %vm388_vm0, %v827_v51, 0.0  ;;  %v823_v57 = vmul.f32 0.25, %v808_v52 }
 0x29f   : > { %v837_v63 = vadd.f32 %v836_v55, %v835_v56 }
 0x2a0   : > { %v829_v58 = vmul.f32 %v821_v54, %v1403_v22  ;;  %v831_v21 = vmul.f32 %v823_v57, %v1411_v24 }
 0x2a1   : > { %v814_v59 = vpop.xlane.xlu1 %813  ;;  %v805_v60 = vpop.xlane.xlu0 %804 }
 0x2a2   : > { %v838_v61 = vsel %vm388_vm0, %v829_v58, 0.0  ;;  %v822_v62 = vmul.f32 0.25, %v805_v60  ;;  %v825_v19 = vmul.f32 0.25, %v814_v59  ;;  %v842_v22 = vsel %vm388_vm0, %v831_v21, 0.0 }
 0x2a3   : > { %v839_v1 = vadd.f32 %v838_v61, %v837_v63 }
 0x2a4   : > { %v830_v0 = vmul.f32 %v822_v62, %v1409_v23  ;;  %v833_v6 = vmul.f32 %v825_v19, %v1419_v26 }
 0x2a5   : > { %v811_v2 = vpop.xlane.xlu0 %810 }
 0x2a6   : > { %v840_v3 = vsel %vm388_vm0, %v830_v0, 0.0  ;;  %v824_v4 = vmul.f32 0.25, %v811_v2  ;;  %v846_v11 = vsel %vm388_vm0, %v833_v6, 0.0 }
 0x2a7   : > { %v841_v5 = vadd.f32 %v840_v3, %v839_v1 }
 0x2a8   : > { %v832_v7 = vmul.f32 %v824_v4, %v1417_v25 }
 0x2a9   : > { %v843_v8 = vadd.f32 %v842_v22, %v841_v5  ;;  %v817_v24 = vpop.xlane.xlu0 %816 }
 0x2aa   : > { %v844_v9 = vsel %vm388_vm0, %v832_v7, 0.0  ;;  %v826_v23 = vmul.f32 0.25, %v817_v24 }
 0x2ab   : > { %v845_v10 = vadd.f32 %v844_v9, %v843_v8 }
 0x2ac   : > { %v834_v12 = vmul.f32 %v826_v23, %v1425_v27 }
 0x2ad   : > { %v847_v13 = vadd.f32 %v846_v11, %v845_v10 }
 0x2ae   : > { %v848_v26 = vsel %vm388_vm0, %v834_v12, 0.0 }
 0x2af   : > { %v849_v14 = vadd.f32 %v848_v26, %v847_v13 }
 0x2b1   : > { %850 = vst.msk [vmem:[%s369_s7] sm:$0xff] %vm388_vm0, %v849_v14 }
 0x2b2   : > { %1227 = shalt.err (!%p1224_p5)
}
 0x2b3   : > { %s1228_s23 = scalar_lea.hbm %s867_s12, 128  ;;  %s1232_s28 = scalar_lea.hbm %s1558_s4, 256 }
 0x2b4   : > { %p1229_p7 = scmp.ne.s32.totalorder %s867_s12, %s1228_s23  ;;  %p1233_p12 = scmp.lt.s32.totalorder %s867_s12, %s1558_s4 }
 0x2b5   : > { %p1234_p13 = scmp.lt.s32.totalorder %s1232_s28, %s1228_s23 }
 0x2b6   : > { %p1230_p10 = pnand %p1229_p7, %p1351_p6 }
 0x2b7   : > { %p1235_p0 = por %p1234_p13, %p1233_p12 }
 0x2b8   : > { %p1231_p11 = pneg %p1230_p10 }
 0x2ba   : > { %p1236_p9 = pnand %p1235_p0, %p1231_p11 }
 0x2bc   : > { %1239 = shalt.err (!%p1236_p9)
}
 0x2bd   : > { %1138 = dma.vmem_to_hbm [thread:$0]  (%p1351_p6), %s870_s9, 128, %s867_s12, %s852_s13   ;;  %v920_v25 = vld [vmem:[%s1462_s26] sm:$0xff] (%p1351_p6)  ;;  %v922_v27 = vld [vmem:[%s1462_s26 + $0x8] sm:$0xff] (%p1351_p6)  ;;  %v924_v15 = vld [vmem:[%s1462_s26 + $0x10] sm:$0xff] (%p1351_p6) }
 0x2be   : > { %875 = sbr.rel (!%p1351_p6) target bundleno = 708 (0x2c4), region = 120  ;;  %s1077_s10 = sshll.u32 (%p1351_p6), %s1329_s22, 3  ;;  %v926_v16 = vld [vmem:[%s1462_s26 + $0x18] sm:$0xff] (%p1351_p6)  ;;  %v928_v17 = vld [vmem:[%s1462_s26 + $0x20] sm:$0xff] (%p1351_p6)  ;;  %v930_v18 = vld [vmem:[%s1462_s26 + $0x28] sm:$0xff] (%p1351_p6) }
 0x2bf   : > { %s877_s9 = scalar_lea.vmem (%p1351_p6), %s1559_s5, %s1077_s10  ;;  %v932_v20 = vld [vmem:[%s1462_s26 + $0x30] sm:$0xff] (%p1351_p6)  ;;  %v934_v28 = vld [vmem:[%s1462_s26 + $0x38] sm:$0xff] (%p1351_p6) }
 0x2c0   : > { %921 = vst [vmem:[%s877_s9] sm:$0xff] (%p1351_p6), %v920_v25  ;;  %923 = vst [vmem:[%s877_s9 + $0x10] sm:$0xff] (%p1351_p6), %v922_v27 }
 0x2c1   : > { %925 = vst [vmem:[%s877_s9 + $0x20] sm:$0xff] (%p1351_p6), %v924_v15  ;;  %927 = vst [vmem:[%s877_s9 + $0x30] sm:$0xff] (%p1351_p6), %v926_v16 }
 0x2c2   : > { %929 = vst [vmem:[%s877_s9 + $0x40] sm:$0xff] (%p1351_p6), %v928_v17  ;;  %931 = vst [vmem:[%s877_s9 + $0x50] sm:$0xff] (%p1351_p6), %v930_v18 }
 0x2c3   : > { %933 = vst [vmem:[%s877_s9 + $0x60] sm:$0xff] %v932_v20  ;;  %935 = vst [vmem:[%s877_s9 + $0x70] sm:$0xff] %v934_v28 }
 0x2c4 PF: > { %s947_s22 = sand.u32 1, %s1262_s18   ;;  %p1564_p6 = scmp.ge.s32.totalorder %s1274_s21, 2 }
 0x2c5   : > { %s948_s29 = scalar_lea.sflag [#allocation5], %s947_s22 }
 0x2c6   : > { %p1141_p9 = pnand %p1564_p6, %p1355_p8 }
 0x2c8   : > { %p1142_p1 = pneg %p1141_p9 }
 0x2ca   : > { %1257 = dma.done.wait (%p1142_p1), %s948_s29, 128  }
 0x2cb   : > { %1259 = vsyncadd (%p1142_p1), %s948_s29, 4294967168  ;;  %p16_p2 = scmp.ge.s32.totalorder %s1333_s24, 4   ;;  %s1565_s18 = smov %s1266_s19 }
 0x2cc   : > { %s1566_s19 = smov %s1270_s20  ;;  %s1567_s20 = smov %s1345_s27 }
 0x2cd   : > { %s1568_s21 = smov %s1333_s24  ;;  %18 = sbr.rel (!%p16_p2) target bundleno = 3 (0x3), region = 210 }
 0x2d2   :  { %960 = vsyncpa [#allocation5], 1 }
 0x2d3   :  { %962 = vsyncpa [#allocation5 + $0x1], 1 }

</bundles_post_ra>
